<compile_context>
chip_gen: v7x
topology: tpu7x:2x2x1
jax: 0.10.0
libtpu: 0.0.40
codegen_flags: <defaults>
</compile_context>

<pallas_src>
import math
import functools

import jax
import jax.numpy as jnp
from jax import lax
from jax.experimental import pallas as pl
from jax.experimental.pallas import tpu as pltpu

LANE = 128
SUBLANE = 8


# ----------------------------------------------------------------------------
# Helpers
# ----------------------------------------------------------------------------

def _round_up(n, m):
    return ((n + m - 1) // m) * m


def _pad2d(x, rows, cols):
    r, c = x.shape
    return jnp.pad(x, ((0, rows - r), (0, cols - c)))


def _vmem_spec():
    return pl.BlockSpec(memory_space=pltpu.MemorySpace.VMEM)


# ----------------------------------------------------------------------------
# Fused Pallas kernel: whole Net forward in one call
# ----------------------------------------------------------------------------

def _make_net_kernel(num_layers, v_has_mlp, t_has_mlp):
    """Builds the fused kernel.  Input ref order (all padded, all in VMEM):
         A (bf16), id_embedding (f32),
         v: features, (mlp_w, mlp_b)?,
         t: features, (mlp_w, mlp_b)?,
         per layer l = 1..num_layers:
            v: (Wc||Wl), lin_b, Wg, g_b,   t: (Wc||Wl), lin_b, Wg, g_b
       followed by the single output ref."""

    def kernel(*refs):
        out_ref = refs[-1]
        it = iter(refs[:-1])

        A = next(it)[...]          # (Np, Np) bf16
        id_emb = next(it)[...]     # (Np, dpad) f32

        def mm(a, b):
            # bf16 MXU operands, f32 accumulation.
            return jnp.dot(a.astype(jnp.bfloat16), b.astype(jnp.bfloat16),
                           preferred_element_type=jnp.float32)

        def leaky(y):
            # F.leaky_relu default negative_slope = 0.01; max form is cheaper.
            return jnp.maximum(y, 0.01 * y)

        def init_branch(has_mlp):
            x = next(it)[...]                       # (Np, fpad) f32 features
            if has_mlp:
                w = next(it)[...]                   # bf16 MLP weight
                b = next(it)[...]                   # f32 MLP bias (1, dlat)
                x = mm(x, w) + b                    # nn.Linear (no activation)
            # F.normalize(p=2, dim=1, eps=1e-12) via rsqrt (EUP)
            sumsq = jnp.sum(x * x, axis=-1, keepdims=True)
            return x * lax.rsqrt(jnp.maximum(sumsq, 1e-24))

        v_x = init_branch(v_has_mlp)
        t_x = init_branch(t_has_mlp)

        for _ in range(num_layers):
            v_wcl = next(it)[...]; v_bl = next(it)[...]
            v_wg = next(it)[...]; v_bg = next(it)[...]
            t_wcl = next(it)[...]; t_bl = next(it)[...]
            t_wg = next(it)[...]; t_bg = next(it)[...]

            dv = v_x.shape[1]                       # lane-aligned (mult of 128)
            dt = t_x.shape[1]

            y_v = mm(v_x, v_wcl)                    # (Np, dv + dpad) = [xWc | xWl]
            y_t = mm(t_x, t_wcl)                    # (Np, dt + dpad)

            # Shared mean aggregation for both branches in ONE MXU pass:
            #   A @ [xw_v || xw_t]
            xw = jnp.concatenate([y_v[:, :dv], y_t[:, :dt]], axis=1)
            agg = mm(A, xw)
            h_v = leaky(agg[:, :dv])
            h_t = leaky(agg[:, dv:])

            xh_v = leaky(y_v[:, dv:] + v_bl) + id_emb
            xh_t = leaky(y_t[:, dt:] + t_bl) + id_emb

            v_x = leaky(mm(h_v, v_wg) + v_bg + xh_v)
            t_x = leaky(mm(h_t, t_wg) + t_bg + xh_t)

        out_ref[...] = (v_x + t_x) * 0.5            # (v_rep + t_rep) / 2 fused in

    return kernel


@functools.partial(jax.jit, static_argnames=("num_layers", "dim_id"))
def net_forward(A, v_feat, t_feat, id_embedding, v_params, t_params, *,
                num_layers, dim_id):
    """Pads/concats parameters to lane-dense shapes and runs the fused kernel.
    Returns the (num_node, dim_id) representation."""
    num_node = A.shape[0]
    npad = _round_up(num_node, SUBLANE)
    dpad = _round_up(dim_id, LANE)

    A_p = _pad2d(A, npad, npad).astype(jnp.bfloat16)
    id_p = _pad2d(id_embedding, npad, dpad)

    def prep_init(params, feat):
        fpad = _round_up(feat.shape[1], LANE)
        args = [_pad2d(feat, npad, fpad)]
        if "mlp_w" in params:
            w = params["mlp_w"]
            wpad_cols = _round_up(w.shape[1], LANE)
            args.append(_pad2d(w, fpad, wpad_cols).astype(jnp.bfloat16))
            args.append(_pad2d(params["mlp_b"].reshape(1, -1), 1, wpad_cols))
            d_in = wpad_cols
        else:
            d_in = fpad
        return args, d_in

    def prep_layer(params, l, d_in):
        p = params[f"layer{l}"]
        wc = _pad2d(p["conv_w"], d_in, d_in)
        wl = _pad2d(p["lin_w"], d_in, dpad)
        return [
            jnp.concatenate([wc, wl], axis=1).astype(jnp.bfloat16),   # Wc || Wl
            _pad2d(p["lin_b"].reshape(1, -1), 1, dpad),
            _pad2d(p["g_w"], d_in, dpad).astype(jnp.bfloat16),
            _pad2d(p["g_b"].reshape(1, -1), 1, dpad),
        ]

    v_init, dv = prep_init(v_params, v_feat)
    t_init, dt = prep_init(t_params, t_feat)

    layer_args = []
    dv_cur, dt_cur = dv, dt
    for l in range(1, num_layers + 1):
        layer_args += prep_layer(v_params, l, dv_cur)
        layer_args += prep_layer(t_params, l, dt_cur)
        dv_cur, dt_cur = dpad, dpad

    args = [A_p, id_p] + v_init + t_init + layer_args
    kernel = _make_net_kernel(num_layers, "mlp_w" in v_params, "mlp_w" in t_params)

    out = pl.pallas_call(
        kernel,
        out_shape=jax.ShapeDtypeStruct((npad, dpad), jnp.float32),
        in_specs=[_vmem_spec() for _ in args],
        out_specs=_vmem_spec(),
    )(*args)
    return out[:num_node, :dim_id]


# ----------------------------------------------------------------------------
# Parameter construction (deterministic, synthetic — no checkpoint loading)
# ----------------------------------------------------------------------------

def xavier_normal(key, shape):
    fan_in, fan_out = shape[0], shape[1]
    std = math.sqrt(2.0 / (fan_in + fan_out))
    return std * jax.random.normal(key, shape, dtype=jnp.float32)


def make_gcn_params(key, dim_feat, dim_id, num_layers, dim_latent=None):
    params = {}
    keys = iter(jax.random.split(key, 64))
    if dim_latent is not None:
        params["mlp_w"] = xavier_normal(next(keys), (dim_feat, dim_latent))
        params["mlp_b"] = 0.01 * jax.random.normal(next(keys), (dim_latent,), jnp.float32)
        d_in = dim_latent
    else:
        d_in = dim_feat
    params["layer1"] = {
        "conv_w": xavier_normal(next(keys), (d_in, d_in)),
        "lin_w": xavier_normal(next(keys), (d_in, dim_id)),
        "lin_b": 0.01 * jax.random.normal(next(keys), (dim_id,), jnp.float32),
        "g_w": xavier_normal(next(keys), (d_in, dim_id)),
        "g_b": 0.01 * jax.random.normal(next(keys), (dim_id,), jnp.float32),
    }
    for l in range(2, num_layers + 1):
        params[f"layer{l}"] = {
            "conv_w": xavier_normal(next(keys), (dim_id, dim_id)),
            "lin_w": xavier_normal(next(keys), (dim_id, dim_id)),
            "lin_b": 0.01 * jax.random.normal(next(keys), (dim_id,), jnp.float32),
            "g_w": xavier_normal(next(keys), (dim_id, dim_id)),
            "g_b": 0.01 * jax.random.normal(next(keys), (dim_id,), jnp.float32),
        }
    return params


def build_adj_mean(edge_index, num_node):
    """Dense row-normalized adjacency: out[i] = mean_{(j->i) in E} x[j]."""
    src = edge_index[0]
    dst = edge_index[1]
    A = jnp.zeros((num_node, num_node), jnp.float32).at[dst, src].add(1.0)
    deg = jnp.sum(A, axis=1, keepdims=True)
    return A / jnp.maximum(deg, 1.0)


# ----------------------------------------------------------------------------
# Main
# ----------------------------------------------------------------------------

if __name__ == "__main__":
    key = jax.random.PRNGKey(0)
    k_v, k_t, k_id, k_vp, k_tp = jax.random.split(key, 5)

    num_node = 16
    dim_x = 32          # dim_id
    dim_v_feat = 64
    dim_t_feat = 48
    dim_latent = 256    # hard-coded for the v branch in the reference Net
    num_layers = 2

    # deterministic edge list (ring + chords), then symmetrized like Net
    edges = [(i, (i + 1) % num_node) for i in range(num_node)]
    edges += [(0, 5), (3, 11), (7, 14), (2, 9)]
    src = jnp.array([e[0] for e in edges], jnp.int32)
    dst = jnp.array([e[1] for e in edges], jnp.int32)
    edge_index = jnp.stack([jnp.concatenate([src, dst]),
                            jnp.concatenate([dst, src])], axis=0)  # (2, 2E)
    A = build_adj_mean(edge_index, num_node)

    v_feat = jax.random.normal(k_v, (num_node, dim_v_feat), jnp.float32)
    t_feat = jax.random.normal(k_t, (num_node, dim_t_feat), jnp.float32)
    id_embedding = xavier_normal(k_id, (num_node, dim_x))

    v_params = make_gcn_params(k_vp, dim_v_feat, dim_x, num_layers, dim_latent=dim_latent)
    t_params = make_gcn_params(k_tp, dim_t_feat, dim_x, num_layers, dim_latent=None)

    representation = net_forward(A, v_feat, t_feat, id_embedding,
                                 v_params, t_params,
                                 num_layers=num_layers, dim_id=dim_x)
    representation = jax.block_until_ready(representation)

    assert representation.shape == (num_node, dim_x)
    assert bool(jnp.all(jnp.isfinite(representation)))
    print("KERNEL_OK")
</pallas_src>

<mosaic_0001>
module attributes {stable_mosaic.version = 11 : i64} {
  func.func @kernel(%arg0: memref<16x16xbf16, #tpu.memory_space<vmem>>, %arg1: memref<16x128xf32, #tpu.memory_space<vmem>>, %arg2: memref<16x128xf32, #tpu.memory_space<vmem>>, %arg3: memref<128x256xbf16, #tpu.memory_space<vmem>>, %arg4: memref<1x256xf32, #tpu.memory_space<vmem>>, %arg5: memref<16x128xf32, #tpu.memory_space<vmem>>, %arg6: memref<256x384xbf16, #tpu.memory_space<vmem>>, %arg7: memref<1x128xf32, #tpu.memory_space<vmem>>, %arg8: memref<256x128xbf16, #tpu.memory_space<vmem>>, %arg9: memref<1x128xf32, #tpu.memory_space<vmem>>, %arg10: memref<128x256xbf16, #tpu.memory_space<vmem>>, %arg11: memref<1x128xf32, #tpu.memory_space<vmem>>, %arg12: memref<128x128xbf16, #tpu.memory_space<vmem>>, %arg13: memref<1x128xf32, #tpu.memory_space<vmem>>, %arg14: memref<128x256xbf16, #tpu.memory_space<vmem>>, %arg15: memref<1x128xf32, #tpu.memory_space<vmem>>, %arg16: memref<128x128xbf16, #tpu.memory_space<vmem>>, %arg17: memref<1x128xf32, #tpu.memory_space<vmem>>, %arg18: memref<128x256xbf16, #tpu.memory_space<vmem>>, %arg19: memref<1x128xf32, #tpu.memory_space<vmem>>, %arg20: memref<128x128xbf16, #tpu.memory_space<vmem>>, %arg21: memref<1x128xf32, #tpu.memory_space<vmem>>, %arg22: memref<16x128xf32, #tpu.memory_space<vmem>>) attributes {dimension_semantics = [], scalar_prefetch = 0 : i64, scratch_operands = 0 : i64, tpu.core_type = #tpu.core_type<tc>} {
    %c0 = arith.constant 0 : index
    %c0_0 = arith.constant 0 : index
    %0 = vector.load %arg0[%c0, %c0_0] : memref<16x16xbf16, #tpu.memory_space<vmem>>, vector<16x16xbf16>
    %c0_1 = arith.constant 0 : index
    %c0_2 = arith.constant 0 : index
    %1 = vector.load %arg1[%c0_1, %c0_2] : memref<16x128xf32, #tpu.memory_space<vmem>>, vector<16x128xf32>
    %c0_3 = arith.constant 0 : index
    %c0_4 = arith.constant 0 : index
    %2 = vector.load %arg2[%c0_3, %c0_4] : memref<16x128xf32, #tpu.memory_space<vmem>>, vector<16x128xf32>
    %c0_5 = arith.constant 0 : index
    %c0_6 = arith.constant 0 : index
    %3 = vector.load %arg3[%c0_5, %c0_6] : memref<128x256xbf16, #tpu.memory_space<vmem>>, vector<128x256xbf16>
    %c0_7 = arith.constant 0 : index
    %c0_8 = arith.constant 0 : index
    %4 = vector.load %arg4[%c0_7, %c0_8] : memref<1x256xf32, #tpu.memory_space<vmem>>, vector<1x256xf32>
    %5 = arith.truncf %2 : vector<16x128xf32> to vector<16x128xbf16>
    %cst = arith.constant dense<0.000000e+00> : vector<16x256xf32>
    %6 = tpu.matmul %5, %3, %cst {dimension_numbers = #tpu.dot_dimension_numbers<[1], [0], [0], [1], [0, 0, 1, 1], [], []>} : vector<16x128xbf16>, vector<128x256xbf16>, vector<16x256xf32> -> vector<16x256xf32>
    %7 = vector.broadcast %4 : vector<1x256xf32> to vector<16x256xf32>
    %8 = arith.addf %6, %7 : vector<16x256xf32>
    %9 = arith.mulf %8, %8 : vector<16x256xf32>
    %cst_9 = arith.constant dense<0.000000e+00> : vector<16xf32>
    %10 = vector.multi_reduction <add>, %9, %cst_9 [1] : vector<16x256xf32> to vector<16xf32>
    %11 = vector.shape_cast %10 : vector<16xf32> to vector<16x1xf32>
    %cst_10 = arith.constant 1.000000e-24 : f32
    %12 = vector.broadcast %cst_10 : f32 to vector<16x1xf32>
    %13 = arith.maximumf %11, %12 : vector<16x1xf32>
    %14 = math.rsqrt %13 : vector<16x1xf32>
    %15 = vector.broadcast %14 : vector<16x1xf32> to vector<16x256xf32>
    %16 = arith.mulf %8, %15 : vector<16x256xf32>
    %c0_11 = arith.constant 0 : index
    %c0_12 = arith.constant 0 : index
    %17 = vector.load %arg5[%c0_11, %c0_12] : memref<16x128xf32, #tpu.memory_space<vmem>>, vector<16x128xf32>
    %18 = arith.mulf %17, %17 : vector<16x128xf32>
    %cst_13 = arith.constant dense<0.000000e+00> : vector<16xf32>
    %19 = vector.multi_reduction <add>, %18, %cst_13 [1] : vector<16x128xf32> to vector<16xf32>
    %20 = vector.shape_cast %19 : vector<16xf32> to vector<16x1xf32>
    %cst_14 = arith.constant 1.000000e-24 : f32
    %21 = vector.broadcast %cst_14 : f32 to vector<16x1xf32>
    %22 = arith.maximumf %20, %21 : vector<16x1xf32>
    %23 = math.rsqrt %22 : vector<16x1xf32>
    %24 = vector.broadcast %23 : vector<16x1xf32> to vector<16x128xf32>
    %25 = arith.mulf %17, %24 : vector<16x128xf32>
    %c0_15 = arith.constant 0 : index
    %c0_16 = arith.constant 0 : index
    %26 = vector.load %arg6[%c0_15, %c0_16] : memref<256x384xbf16, #tpu.memory_space<vmem>>, vector<256x384xbf16>
    %c0_17 = arith.constant 0 : index
    %c0_18 = arith.constant 0 : index
    %27 = vector.load %arg7[%c0_17, %c0_18] : memref<1x128xf32, #tpu.memory_space<vmem>>, vector<1x128xf32>
    %c0_19 = arith.constant 0 : index
    %c0_20 = arith.constant 0 : index
    %28 = vector.load %arg8[%c0_19, %c0_20] : memref<256x128xbf16, #tpu.memory_space<vmem>>, vector<256x128xbf16>
    %c0_21 = arith.constant 0 : index
    %c0_22 = arith.constant 0 : index
    %29 = vector.load %arg9[%c0_21, %c0_22] : memref<1x128xf32, #tpu.memory_space<vmem>>, vector<1x128xf32>
    %c0_23 = arith.constant 0 : index
    %c0_24 = arith.constant 0 : index
    %30 = vector.load %arg10[%c0_23, %c0_24] : memref<128x256xbf16, #tpu.memory_space<vmem>>, vector<128x256xbf16>
    %c0_25 = arith.constant 0 : index
    %c0_26 = arith.constant 0 : index
    %31 = vector.load %arg11[%c0_25, %c0_26] : memref<1x128xf32, #tpu.memory_space<vmem>>, vector<1x128xf32>
    %c0_27 = arith.constant 0 : index
    %c0_28 = arith.constant 0 : index
    %32 = vector.load %arg12[%c0_27, %c0_28] : memref<128x128xbf16, #tpu.memory_space<vmem>>, vector<128x128xbf16>
    %c0_29 = arith.constant 0 : index
    %c0_30 = arith.constant 0 : index
    %33 = vector.load %arg13[%c0_29, %c0_30] : memref<1x128xf32, #tpu.memory_space<vmem>>, vector<1x128xf32>
    %34 = arith.truncf %16 : vector<16x256xf32> to vector<16x256xbf16>
    %cst_31 = arith.constant dense<0.000000e+00> : vector<16x384xf32>
    %35 = tpu.matmul %34, %26, %cst_31 {dimension_numbers = #tpu.dot_dimension_numbers<[1], [0], [0], [1], [0, 0, 1, 1], [], []>} : vector<16x256xbf16>, vector<256x384xbf16>, vector<16x384xf32> -> vector<16x384xf32>
    %36 = arith.truncf %25 : vector<16x128xf32> to vector<16x128xbf16>
    %cst_32 = arith.constant dense<0.000000e+00> : vector<16x256xf32>
    %37 = tpu.matmul %36, %30, %cst_32 {dimension_numbers = #tpu.dot_dimension_numbers<[1], [0], [0], [1], [0, 0, 1, 1], [], []>} : vector<16x128xbf16>, vector<128x256xbf16>, vector<16x256xf32> -> vector<16x256xf32>
    %38 = vector.extract_strided_slice %35 {offsets = [0, 0], sizes = [16, 256], strides = [1, 1]} : vector<16x384xf32> to vector<16x256xf32>
    %39 = vector.extract_strided_slice %37 {offsets = [0, 0], sizes = [16, 128], strides = [1, 1]} : vector<16x256xf32> to vector<16x128xf32>
    %40 = tpu.concatenate %38, %39 in 1 : vector<16x256xf32>, vector<16x128xf32> -> vector<16x384xf32>
    %41 = arith.truncf %40 : vector<16x384xf32> to vector<16x384xbf16>
    %cst_33 = arith.constant dense<0.000000e+00> : vector<16x384xf32>
    %42 = tpu.matmul %0, %41, %cst_33 {dimension_numbers = #tpu.dot_dimension_numbers<[1], [0], [0], [1], [0, 0, 1, 1], [], []>} : vector<16x16xbf16>, vector<16x384xbf16>, vector<16x384xf32> -> vector<16x384xf32>
    %43 = vector.extract_strided_slice %42 {offsets = [0, 0], sizes = [16, 256], strides = [1, 1]} : vector<16x384xf32> to vector<16x256xf32>
    %cst_34 = arith.constant 0.00999999977 : f32
    %44 = vector.broadcast %cst_34 : f32 to vector<16x256xf32>
    %45 = arith.mulf %44, %43 : vector<16x256xf32>
    %46 = arith.maximumf %43, %45 : vector<16x256xf32>
    %47 = vector.extract_strided_slice %42 {offsets = [0, 256], sizes = [16, 128], strides = [1, 1]} : vector<16x384xf32> to vector<16x128xf32>
    %cst_35 = arith.constant 0.00999999977 : f32
    %48 = vector.broadcast %cst_35 : f32 to vector<16x128xf32>
    %49 = arith.mulf %48, %47 : vector<16x128xf32>
    %50 = arith.maximumf %47, %49 : vector<16x128xf32>
    %51 = vector.extract_strided_slice %35 {offsets = [0, 256], sizes = [16, 128], strides = [1, 1]} : vector<16x384xf32> to vector<16x128xf32>
    %52 = vector.broadcast %27 : vector<1x128xf32> to vector<16x128xf32>
    %53 = arith.addf %51, %52 : vector<16x128xf32>
    %cst_36 = arith.constant 0.00999999977 : f32
    %54 = vector.broadcast %cst_36 : f32 to vector<16x128xf32>
    %55 = arith.mulf %54, %53 : vector<16x128xf32>
    %56 = arith.maximumf %53, %55 : vector<16x128xf32>
    %57 = arith.addf %56, %1 : vector<16x128xf32>
    %58 = vector.extract_strided_slice %37 {offsets = [0, 128], sizes = [16, 128], strides = [1, 1]} : vector<16x256xf32> to vector<16x128xf32>
    %59 = vector.broadcast %31 : vector<1x128xf32> to vector<16x128xf32>
    %60 = arith.addf %58, %59 : vector<16x128xf32>
    %cst_37 = arith.constant 0.00999999977 : f32
    %61 = vector.broadcast %cst_37 : f32 to vector<16x128xf32>
    %62 = arith.mulf %61, %60 : vector<16x128xf32>
    %63 = arith.maximumf %60, %62 : vector<16x128xf32>
    %64 = arith.addf %63, %1 : vector<16x128xf32>
    %65 = arith.truncf %46 : vector<16x256xf32> to vector<16x256xbf16>
    %cst_38 = arith.constant dense<0.000000e+00> : vector<16x128xf32>
    %66 = tpu.matmul %65, %28, %cst_38 {dimension_numbers = #tpu.dot_dimension_numbers<[1], [0], [0], [1], [0, 0, 1, 1], [], []>} : vector<16x256xbf16>, vector<256x128xbf16>, vector<16x128xf32> -> vector<16x128xf32>
    %67 = vector.broadcast %29 : vector<1x128xf32> to vector<16x128xf32>
    %68 = arith.addf %66, %67 : vector<16x128xf32>
    %69 = arith.addf %68, %57 : vector<16x128xf32>
    %cst_39 = arith.constant 0.00999999977 : f32
    %70 = vector.broadcast %cst_39 : f32 to vector<16x128xf32>
    %71 = arith.mulf %70, %69 : vector<16x128xf32>
    %72 = arith.maximumf %69, %71 : vector<16x128xf32>
    %73 = arith.truncf %50 : vector<16x128xf32> to vector<16x128xbf16>
    %cst_40 = arith.constant dense<0.000000e+00> : vector<16x128xf32>
    %74 = tpu.matmul %73, %32, %cst_40 {dimension_numbers = #tpu.dot_dimension_numbers<[1], [0], [0], [1], [0, 0, 1, 1], [], []>} : vector<16x128xbf16>, vector<128x128xbf16>, vector<16x128xf32> -> vector<16x128xf32>
    %75 = vector.broadcast %33 : vector<1x128xf32> to vector<16x128xf32>
    %76 = arith.addf %74, %75 : vector<16x128xf32>
    %77 = arith.addf %76, %64 : vector<16x128xf32>
    %cst_41 = arith.constant 0.00999999977 : f32
    %78 = vector.broadcast %cst_41 : f32 to vector<16x128xf32>
    %79 = arith.mulf %78, %77 : vector<16x128xf32>
    %80 = arith.maximumf %77, %79 : vector<16x128xf32>
    %c0_42 = arith.constant 0 : index
    %c0_43 = arith.constant 0 : index
    %81 = vector.load %arg14[%c0_42, %c0_43] : memref<128x256xbf16, #tpu.memory_space<vmem>>, vector<128x256xbf16>
    %c0_44 = arith.constant 0 : index
    %c0_45 = arith.constant 0 : index
    %82 = vector.load %arg15[%c0_44, %c0_45] : memref<1x128xf32, #tpu.memory_space<vmem>>, vector<1x128xf32>
    %c0_46 = arith.constant 0 : index
    %c0_47 = arith.constant 0 : index
    %83 = vector.load %arg16[%c0_46, %c0_47] : memref<128x128xbf16, #tpu.memory_space<vmem>>, vector<128x128xbf16>
    %c0_48 = arith.constant 0 : index
    %c0_49 = arith.constant 0 : index
    %84 = vector.load %arg17[%c0_48, %c0_49] : memref<1x128xf32, #tpu.memory_space<vmem>>, vector<1x128xf32>
    %c0_50 = arith.constant 0 : index
    %c0_51 = arith.constant 0 : index
    %85 = vector.load %arg18[%c0_50, %c0_51] : memref<128x256xbf16, #tpu.memory_space<vmem>>, vector<128x256xbf16>
    %c0_52 = arith.constant 0 : index
    %c0_53 = arith.constant 0 : index
    %86 = vector.load %arg19[%c0_52, %c0_53] : memref<1x128xf32, #tpu.memory_space<vmem>>, vector<1x128xf32>
    %c0_54 = arith.constant 0 : index
    %c0_55 = arith.constant 0 : index
    %87 = vector.load %arg20[%c0_54, %c0_55] : memref<128x128xbf16, #tpu.memory_space<vmem>>, vector<128x128xbf16>
    %c0_56 = arith.constant 0 : index
    %c0_57 = arith.constant 0 : index
    %88 = vector.load %arg21[%c0_56, %c0_57] : memref<1x128xf32, #tpu.memory_space<vmem>>, vector<1x128xf32>
    %89 = arith.truncf %72 : vector<16x128xf32> to vector<16x128xbf16>
    %cst_58 = arith.constant dense<0.000000e+00> : vector<16x256xf32>
    %90 = tpu.matmul %89, %81, %cst_58 {dimension_numbers = #tpu.dot_dimension_numbers<[1], [0], [0], [1], [0, 0, 1, 1], [], []>} : vector<16x128xbf16>, vector<128x256xbf16>, vector<16x256xf32> -> vector<16x256xf32>
    %91 = arith.truncf %80 : vector<16x128xf32> to vector<16x128xbf16>
    %cst_59 = arith.constant dense<0.000000e+00> : vector<16x256xf32>
    %92 = tpu.matmul %91, %85, %cst_59 {dimension_numbers = #tpu.dot_dimension_numbers<[1], [0], [0], [1], [0, 0, 1, 1], [], []>} : vector<16x128xbf16>, vector<128x256xbf16>, vector<16x256xf32> -> vector<16x256xf32>
    %93 = vector.extract_strided_slice %90 {offsets = [0, 0], sizes = [16, 128], strides = [1, 1]} : vector<16x256xf32> to vector<16x128xf32>
    %94 = vector.extract_strided_slice %92 {offsets = [0, 0], sizes = [16, 128], strides = [1, 1]} : vector<16x256xf32> to vector<16x128xf32>
    %95 = tpu.concatenate %93, %94 in 1 : vector<16x128xf32>, vector<16x128xf32> -> vector<16x256xf32>
    %96 = arith.truncf %95 : vector<16x256xf32> to vector<16x256xbf16>
    %cst_60 = arith.constant dense<0.000000e+00> : vector<16x256xf32>
    %97 = tpu.matmul %0, %96, %cst_60 {dimension_numbers = #tpu.dot_dimension_numbers<[1], [0], [0], [1], [0, 0, 1, 1], [], []>} : vector<16x16xbf16>, vector<16x256xbf16>, vector<16x256xf32> -> vector<16x256xf32>
    %98 = vector.extract_strided_slice %97 {offsets = [0, 0], sizes = [16, 128], strides = [1, 1]} : vector<16x256xf32> to vector<16x128xf32>
    %cst_61 = arith.constant 0.00999999977 : f32
    %99 = vector.broadcast %cst_61 : f32 to vector<16x128xf32>
    %100 = arith.mulf %99, %98 : vector<16x128xf32>
    %101 = arith.maximumf %98, %100 : vector<16x128xf32>
    %102 = vector.extract_strided_slice %97 {offsets = [0, 128], sizes = [16, 128], strides = [1, 1]} : vector<16x256xf32> to vector<16x128xf32>
    %cst_62 = arith.constant 0.00999999977 : f32
    %103 = vector.broadcast %cst_62 : f32 to vector<16x128xf32>
    %104 = arith.mulf %103, %102 : vector<16x128xf32>
    %105 = arith.maximumf %102, %104 : vector<16x128xf32>
    %106 = vector.extract_strided_slice %90 {offsets = [0, 128], sizes = [16, 128], strides = [1, 1]} : vector<16x256xf32> to vector<16x128xf32>
    %107 = vector.broadcast %82 : vector<1x128xf32> to vector<16x128xf32>
    %108 = arith.addf %106, %107 : vector<16x128xf32>
    %cst_63 = arith.constant 0.00999999977 : f32
    %109 = vector.broadcast %cst_63 : f32 to vector<16x128xf32>
    %110 = arith.mulf %109, %108 : vector<16x128xf32>
    %111 = arith.maximumf %108, %110 : vector<16x128xf32>
    %112 = arith.addf %111, %1 : vector<16x128xf32>
    %113 = vector.extract_strided_slice %92 {offsets = [0, 128], sizes = [16, 128], strides = [1, 1]} : vector<16x256xf32> to vector<16x128xf32>
    %114 = vector.broadcast %86 : vector<1x128xf32> to vector<16x128xf32>
    %115 = arith.addf %113, %114 : vector<16x128xf32>
    %cst_64 = arith.constant 0.00999999977 : f32
    %116 = vector.broadcast %cst_64 : f32 to vector<16x128xf32>
    %117 = arith.mulf %116, %115 : vector<16x128xf32>
    %118 = arith.maximumf %115, %117 : vector<16x128xf32>
    %119 = arith.addf %118, %1 : vector<16x128xf32>
    %120 = arith.truncf %101 : vector<16x128xf32> to vector<16x128xbf16>
    %cst_65 = arith.constant dense<0.000000e+00> : vector<16x128xf32>
    %121 = tpu.matmul %120, %83, %cst_65 {dimension_numbers = #tpu.dot_dimension_numbers<[1], [0], [0], [1], [0, 0, 1, 1], [], []>} : vector<16x128xbf16>, vector<128x128xbf16>, vector<16x128xf32> -> vector<16x128xf32>
    %122 = vector.broadcast %84 : vector<1x128xf32> to vector<16x128xf32>
    %123 = arith.addf %121, %122 : vector<16x128xf32>
    %124 = arith.addf %123, %112 : vector<16x128xf32>
    %cst_66 = arith.constant 0.00999999977 : f32
    %125 = vector.broadcast %cst_66 : f32 to vector<16x128xf32>
    %126 = arith.mulf %125, %124 : vector<16x128xf32>
    %127 = arith.maximumf %124, %126 : vector<16x128xf32>
    %128 = arith.truncf %105 : vector<16x128xf32> to vector<16x128xbf16>
    %cst_67 = arith.constant dense<0.000000e+00> : vector<16x128xf32>
    %129 = tpu.matmul %128, %87, %cst_67 {dimension_numbers = #tpu.dot_dimension_numbers<[1], [0], [0], [1], [0, 0, 1, 1], [], []>} : vector<16x128xbf16>, vector<128x128xbf16>, vector<16x128xf32> -> vector<16x128xf32>
    %130 = vector.broadcast %88 : vector<1x128xf32> to vector<16x128xf32>
    %131 = arith.addf %129, %130 : vector<16x128xf32>
    %132 = arith.addf %131, %119 : vector<16x128xf32>
    %cst_68 = arith.constant 0.00999999977 : f32
    %133 = vector.broadcast %cst_68 : f32 to vector<16x128xf32>
    %134 = arith.mulf %133, %132 : vector<16x128xf32>
    %135 = arith.maximumf %132, %134 : vector<16x128xf32>
    %136 = arith.addf %127, %135 : vector<16x128xf32>
    %cst_69 = arith.constant 5.000000e-01 : f32
    %137 = vector.broadcast %cst_69 : f32 to vector<16x128xf32>
    %138 = arith.mulf %136, %137 : vector<16x128xf32>
    %c0_70 = arith.constant 0 : index
    %c0_71 = arith.constant 0 : index
    %139 = vector.load %arg22[%c0_70, %c0_71] : memref<16x128xf32, #tpu.memory_space<vmem>>, vector<16x128xf32>
    tpu.vector_store %arg22[%c0_70, %c0_71], %138 {strides = array<i32>} : memref<16x128xf32, #tpu.memory_space<vmem>>, vector<16x128xf32>,
    return
  }
}

</mosaic_0001>

<bundles_post_ra>
// kernel: net_forward.1
= control target key start
LH: loop header
LB: loop body
LE: loop exit
PB: predicated region body
PF: predicated region fallthrough
CT: control target
= control target key end

     0   :  { %s3148_s0 = inlined_call_operand.vmem [shape: bf16[16,16], index: 0, kind: input, shape index: {}]   ;;  %s3149_s1 = inlined_call_operand.vmem [shape: f32[16,128], index: 1, kind: input, shape index: {}]   ;;  %s3150_s2 = inlined_call_operand.vmem [shape: f32[16,128], index: 2, kind: input, shape index: {}]   ;;  %s3151_s3 = inlined_call_operand.vmem [shape: bf16[128,256], index: 3, kind: input, shape index: {}]   ;;  %s3152_s4 = inlined_call_operand.vmem [shape: f32[1,256], index: 4, kind: input, shape index: {}]   ;;  %s3153_s5 = inlined_call_operand.vmem [shape: f32[16,128], index: 5, kind: input, shape index: {}]   ;;  %s3154_s6 = inlined_call_operand.vmem [shape: bf16[256,384], index: 6, kind: input, shape index: {}]   ;;  %s3155_s7 = inlined_call_operand.vmem [shape: f32[1,128], index: 7, kind: input, shape index: {}]   ;;  %s3156_s8 = inlined_call_operand.vmem [shape: bf16[256,128], index: 8, kind: input, shape index: {}]   ;;  %s3157_s9 = inlined_call_operand.vmem [shape: f32[1,128], index: 9, kind: input, shape index: {}]   ;;  %s3158_s10 = inlined_call_operand.vmem [shape: bf16[128,256], index: 10, kind: input, shape index: {}]   ;;  %s3159_s11 = inlined_call_operand.vmem [shape: f32[1,128], index: 11, kind: input, shape index: {}]   ;;  %s3160_s12 = inlined_call_operand.vmem [shape: bf16[128,128], index: 12, kind: input, shape index: {}]   ;;  %s3161_s13 = inlined_call_operand.vmem [shape: f32[1,128], index: 13, kind: input, shape index: {}]   ;;  %s3162_s14 = inlined_call_operand.vmem [shape: bf16[128,256], index: 14, kind: input, shape index: {}]   ;;  %s3163_s15 = inlined_call_operand.vmem [shape: f32[1,128], index: 15, kind: input, shape index: {}]   ;;  %s3164_s16 = inlined_call_operand.vmem [shape: bf16[128,128], index: 16, kind: input, shape index: {}]   ;;  %s3165_s17 = inlined_call_operand.vmem [shape: f32[1,128], index: 17, kind: input, shape index: {}]   ;;  %s3166_s18 = inlined_call_operand.vmem [shape: bf16[128,256], index: 18, kind: input, shape index: {}]   ;;  %s3167_s19 = inlined_call_operand.vmem [shape: f32[1,128], index: 19, kind: input, shape index: {}]   ;;  %s3168_s20 = inlined_call_operand.vmem [shape: bf16[128,128], index: 20, kind: input, shape index: {}]   ;;  %s3169_s21 = inlined_call_operand.vmem [shape: f32[1,128], index: 21, kind: input, shape index: {}]   ;;  %s3170_s22 = inlined_call_operand.hbm [shape: f32[16,128], index: 22, kind: output, shape index: {}]  }
   0x1   :  { %3176 = sst [smem:[#allocation5_spill]] %s3148_s0 }
   0x2   :  { %3177 = sst [smem:[#allocation6_spill]] %s3149_s1 }
   0x3   :  { %3178 = sst [smem:[#allocation7_spill]] %s3150_s2 }
   0x4   :  { %3179 = sst [smem:[#allocation8_spill]] %s3151_s3 }
   0x5   :  { %3180 = sst [smem:[#allocation9_spill]] %s3152_s4 }
   0x6   :  { %3181 = sst [smem:[#allocation10_spill]] %s3153_s5 }
   0x7   :  { %3182 = sst [smem:[#allocation11_spill]] %s3154_s6 }
   0x8   :  { %s3183_s29 = sld [smem:[#allocation8_spill]]  ;;  %v2415_v2 = vmov 0   ;;  %s3184_s1 = sld [smem:[#allocation7_spill]] }
   0x9   :  { %220 = vmatprep.mubr.bf16.mxu0 %v2415_v2 }
   0xe   :  { %v2182_v0 = vld [vmem:[%s3183_s29 + $0x4] ss:$8 sps:$4 sm:$0xff]   ;;  %v2184_v1 = vld [vmem:[%s3183_s29] ss:$8 sps:$4 sm:$0xff]   ;;  %v2185_v3 = vld [vmem:[%s3183_s29 + $0x14] ss:$8 sps:$4 sm:$0xff]  }
   0xf   :  { %188 = vmatprep.subr.bf16.mxu0 %v2182_v0  ;;  %v2187_v4 = vld [vmem:[%s3183_s29 + $0x10] ss:$8 sps:$4 sm:$0xff]   ;;  %v2188_v5 = vld [vmem:[%s3183_s29 + $0x24] ss:$8 sps:$4 sm:$0xff]   ;;  %v2190_v6 = vld [vmem:[%s3183_s29 + $0x20] ss:$8 sps:$4 sm:$0xff]  }
  0x10   :  { %189 = vmatpush1.bf16.msra.mxu0 %v2184_v1  ;;  %v2191_v7 = vld [vmem:[%s3183_s29 + $0x34] ss:$8 sps:$4 sm:$0xff]   ;;  %v2193_v8 = vld [vmem:[%s3183_s29 + $0x30] ss:$8 sps:$4 sm:$0xff]   ;;  %v2194_v9 = vld [vmem:[%s3183_s29 + $0x44] ss:$8 sps:$4 sm:$0xff]  }
  0x11   :  { %190 = vmatprep.subr.bf16.mxu0 %v2185_v3  ;;  %v2196_v10 = vld [vmem:[%s3183_s29 + $0x40] ss:$8 sps:$4 sm:$0xff]   ;;  %v2197_v11 = vld [vmem:[%s3183_s29 + $0x54] ss:$8 sps:$4 sm:$0xff]   ;;  %v2199_v12 = vld [vmem:[%s3183_s29 + $0x50] ss:$8 sps:$4 sm:$0xff]  }
  0x12   :  { %v2200_v13 = vld [vmem:[%s3183_s29 + $0x64] ss:$8 sps:$4 sm:$0xff]   ;;  %v2202_v14 = vld [vmem:[%s3183_s29 + $0x60] ss:$8 sps:$4 sm:$0xff]   ;;  %v2203_v15 = vld [vmem:[%s3183_s29 + $0x74] ss:$8 sps:$4 sm:$0xff]  }
  0x13   :  { %v2205_v16 = vld [vmem:[%s3183_s29 + $0x70] ss:$8 sps:$4 sm:$0xff]   ;;  %v77_v17 = vld [vmem:[%s3184_s1] sm:$0xff]  ;;  %v78_v18 = vld [vmem:[%s3184_s1 + $0x8] sm:$0xff] }
  0x14   :  { %191 = vmatpush1.bf16.msra.mxu0 %v2187_v4  ;;  %v96_v19 = vpack.c.bf16 %v78_v18, %v77_v17 }
  0x15   :  { %192 = vmatprep.subr.bf16.mxu0 %v2188_v5 }
  0x18   :  { %193 = vmatpush1.bf16.msra.mxu0 %v2190_v6 }
  0x19   :  { %194 = vmatprep.subr.bf16.mxu0 %v2191_v7 }
  0x1c   :  { %195 = vmatpush1.bf16.msra.mxu0 %v2193_v8 }
  0x1d   :  { %196 = vmatprep.subr.bf16.mxu0 %v2194_v9 }
  0x20   :  { %197 = vmatpush1.bf16.msra.mxu0 %v2196_v10 }
  0x21   :  { %198 = vmatprep.subr.bf16.mxu0 %v2197_v11 }
  0x24   :  { %199 = vmatpush1.bf16.msra.mxu0 %v2199_v12 }
  0x25   :  { %200 = vmatprep.subr.bf16.mxu0 %v2200_v13 }
  0x28   :  { %201 = vmatpush1.bf16.msra.mxu0 %v2202_v14 }
  0x29   :  { %202 = vmatprep.subr.bf16.mxu0 %v2203_v15 }
  0x2c   :  { %203 = vmatpush1.bf16.msra.mxu0 %v2205_v16 }
  0x2f   :  { %221 = vmatmul.mubr.bf16.vlgmr.msra.gmra.mrb[0].mxu0 %v96_v19 }
  0x30   :  { %27 = vsyncpa [#allocation3], 0  ;;  %s3185_s26 = sld [smem:[#allocation10_spill]]  ;;  %s3186_s28 = sld [smem:[#allocation11_spill]]  ;;  %v98_v52 = vlaneseq  ;;  %vm2417_vm0 = vmmov 0   ;;  %vm869_vm1 = vcmask 130048  }
  0x31   :  { %s3187_s30 = sld [smem:[#allocation9_spill]]  ;;  %s3188_s4 = sld [smem:[#allocation5_spill]] }
  0x32   :  { %v99_v53 = vshrl.u32 %v98_v52, 7  ;;  %v2281_v52 = vld [vmem:[%s3158_s10 + $0x34] ss:$8 sps:$4 sm:$0xff]   ;;  %s3189_s2 = sld [smem:[#allocation6_spill]] }
  0x34   :  { %v100_v54 = vsub.s32 0, %v99_v53  ;;  %v104_v56 = vsub.s32 1, %v99_v53 }
  0x36   :  { %v2594_v20 = vld [vmem:[%s3185_s26] sm:$0xff]  ;;  %v2599_v21 = vld [vmem:[%s3185_s26 + $0x8] sm:$0xff]  ;;  %v2214_v31 = vld [vmem:[%s3186_s28 + $0x30] ss:$12 sps:$4 sm:$0xff]  }
  0x37   :  { %v2206_v22 = vld [vmem:[%s3186_s28 + $0x4] ss:$12 sps:$4 sm:$0xff]   ;;  %v251_v23 = vmul.f32 %v2594_v20, %v2594_v20  ;;  %v2208_v24 = vld [vmem:[%s3186_s28] ss:$12 sps:$4 sm:$0xff]   ;;  %v2209_v25 = vld [vmem:[%s3186_s28 + $0x1c] ss:$12 sps:$4 sm:$0xff]   ;;  %v252_v26 = vmul.f32 %v2599_v21, %v2599_v21 }
  0x38   :  { %653 = vmatprep.subr.bf16.mxu1 %v2206_v22  ;;  %v2211_v27 = vld [vmem:[%s3186_s28 + $0x18] ss:$12 sps:$4 sm:$0xff]   ;;  %v2212_v28 = vld [vmem:[%s3186_s28 + $0x34] ss:$12 sps:$4 sm:$0xff]   ;;  %v2221_v40 = vld [vmem:[%s3186_s28 + $0x7c] ss:$12 sps:$4 sm:$0xff]  }
  0x39   :  { %253 = vadd.xlane.f32.xlu1 %v251_v23  ;;  %654 = vmatpush1.bf16.msra.mxu1 %v2208_v24  ;;  %v2230_v29 = vld [vmem:[%s3186_s28 + $0xc8] ss:$12 sps:$4 sm:$0xff]   ;;  %v2235_v32 = vld [vmem:[%s3186_s28 + $0xe0] ss:$12 sps:$4 sm:$0xff]   ;;  %v2240_v35 = vld [vmem:[%s3186_s28 + $0xf8] ss:$12 sps:$4 sm:$0xff]  }
  0x3a   :  { %655 = vmatprep.subr.bf16.mxu1 %v2209_v25  ;;  %v2233_v30 = vld [vmem:[%s3186_s28 + $0x8] ss:$12 sps:$4 sm:$0xff]   ;;  %v2215_v33 = vld [vmem:[%s3186_s28 + $0x4c] ss:$12 sps:$4 sm:$0xff]   ;;  %2037 = vmatprep.subr.bf16.mxu0 %v2230_v29  ;;  %v2218_v37 = vld [vmem:[%s3186_s28 + $0x64] ss:$12 sps:$4 sm:$0xff]  }
  0x3b   :  { %2038 = vmatpush3.bf16.msra.mxu0 %v2233_v30  ;;  %v2238_v34 = vld [vmem:[%s3186_s28 + $0x20] ss:$12 sps:$4 sm:$0xff]   ;;  %v2217_v36 = vld [vmem:[%s3186_s28 + $0x48] ss:$12 sps:$4 sm:$0xff]   ;;  %v2243_v38 = vld [vmem:[%s3186_s28 + $0x38] ss:$12 sps:$4 sm:$0xff]  }
  0x3c   :  { %2039 = vmatprep.subr.bf16.mxu0 %v2235_v32  ;;  %v2220_v39 = vld [vmem:[%s3186_s28 + $0x60] ss:$12 sps:$4 sm:$0xff]   ;;  %v2223_v41 = vld [vmem:[%s3186_s28 + $0x78] ss:$12 sps:$4 sm:$0xff]   ;;  %v2226_v43 = vld [vmem:[%s3186_s28 + $0x90] ss:$12 sps:$4 sm:$0xff]  }
  0x3d   :  { %255 = vadd.xlane.f32.xlu1 %v252_v26  ;;  %656 = vmatpush1.bf16.msra.mxu1 %v2211_v27  ;;  %v2224_v42 = vld [vmem:[%s3186_s28 + $0x94] ss:$12 sps:$4 sm:$0xff]   ;;  %v2227_v44 = vld [vmem:[%s3186_s28 + $0xac] ss:$12 sps:$4 sm:$0xff]   ;;  %v2231_v46 = vld [vmem:[%s3186_s28 + $0xc4] ss:$12 sps:$4 sm:$0xff]  }
  0x3e   :  { %657 = vmatprep.subr.bf16.mxu1 %v2212_v28  ;;  %v2229_v45 = vld [vmem:[%s3186_s28 + $0xa8] ss:$12 sps:$4 sm:$0xff]   ;;  %v2234_v47 = vld [vmem:[%s3186_s28 + $0xc0] ss:$12 sps:$4 sm:$0xff]   ;;  %v2239_v49 = vld [vmem:[%s3186_s28 + $0xd8] ss:$12 sps:$4 sm:$0xff]  }
  0x3f   :  { %2040 = vmatpush3.bf16.msra.mxu0 %v2238_v34  ;;  %v2236_v48 = vld [vmem:[%s3186_s28 + $0xdc] ss:$12 sps:$4 sm:$0xff]   ;;  %v2241_v50 = vld [vmem:[%s3186_s28 + $0xf4] ss:$12 sps:$4 sm:$0xff]   ;;  %v2246_v11 = vld [vmem:[%s3186_s28 + $0x10c] ss:$12 sps:$4 sm:$0xff]  }
  0x40   :  { %2041 = vmatprep.subr.bf16.mxu0 %v2240_v35  ;;  %v2244_v51 = vld [vmem:[%s3186_s28 + $0xf0] ss:$12 sps:$4 sm:$0xff]   ;;  %v95_v55 = vld [vmem:[%s3187_s30] sm:$0x3]  ;;  %v2249_v13 = vld [vmem:[%s3186_s28 + $0x108] ss:$12 sps:$4 sm:$0xff]  }
  0x41   :  { %658 = vmatpush1.bf16.msra.mxu1 %v2214_v31  ;;  %v101_v57 = vrot.slane %v95_v55, %v100_v54  ;;  %v105_v58 = vrot.slane %v95_v55, %v104_v56  ;;  %v2245_v10 = vld [vmem:[%s3186_s28 + $0x110] ss:$12 sps:$4 sm:$0xff]   ;;  %v2250_v14 = vld [vmem:[%s3186_s28 + $0x128] ss:$12 sps:$4 sm:$0xff]   ;;  %v2254_v17 = vld [vmem:[%s3186_s28 + $0x120] ss:$12 sps:$4 sm:$0xff]  }
  0x42   :  { %659 = vmatprep.subr.bf16.mxu1 %v2215_v33  ;;  %v2248_v12 = vld [vmem:[%s3186_s28 + $0x50] ss:$12 sps:$4 sm:$0xff]   ;;  %v2253_v16 = vld [vmem:[%s3186_s28 + $0x68] ss:$12 sps:$4 sm:$0xff]   ;;  %v2255_v18 = vld [vmem:[%s3186_s28 + $0x140] ss:$12 sps:$4 sm:$0xff]  }
  0x43   :  { %2042 = vmatpush3.bf16.msra.mxu0 %v2243_v38  ;;  %v2251_v15 = vld [vmem:[%s3186_s28 + $0x124] ss:$12 sps:$4 sm:$0xff]   ;;  %v2256_v19 = vld [vmem:[%s3186_s28 + $0x13c] ss:$12 sps:$4 sm:$0xff]   ;;  %v2258_v22 = vld [vmem:[%s3186_s28 + $0x80] ss:$12 sps:$4 sm:$0xff]  }
  0x44   :  { %2043 = vmatprep.subr.bf16.mxu0 %v2245_v10  ;;  %v2259_v23 = vld [vmem:[%s3186_s28 + $0x138] ss:$12 sps:$4 sm:$0xff]   ;;  %v2261_v25 = vld [vmem:[%s3186_s28 + $0x154] ss:$12 sps:$4 sm:$0xff]   ;;  %v2264_v27 = vld [vmem:[%s3186_s28 + $0x150] ss:$12 sps:$4 sm:$0xff]  }
  0x45   :  { %660 = vmatpush1.bf16.msra.mxu1 %v2217_v36  ;;  %v2260_v24 = vld [vmem:[%s3186_s28 + $0x158] ss:$12 sps:$4 sm:$0xff]   ;;  %v2265_v28 = vld [vmem:[%s3186_s28 + $0x170] ss:$12 sps:$4 sm:$0xff]   ;;  %v2269_v31 = vld [vmem:[%s3186_s28 + $0x168] ss:$12 sps:$4 sm:$0xff]  }
  0x46   :  { %661 = vmatprep.subr.bf16.mxu1 %v2218_v37  ;;  %v2263_v26 = vld [vmem:[%s3186_s28 + $0x98] ss:$12 sps:$4 sm:$0xff]   ;;  %v2268_v30 = vld [vmem:[%s3186_s28 + $0xb0] ss:$12 sps:$4 sm:$0xff]  }
  0x47   :  { %2044 = vmatpush3.bf16.msra.mxu0 %v2248_v12  ;;  %v2266_v29 = vld [vmem:[%s3186_s28 + $0x16c] ss:$12 sps:$4 sm:$0xff]  }
  0x48   :  { %2045 = vmatprep.subr.bf16.mxu0 %v2250_v14  ;;  %v2272_v32 = vld [vmem:[%s3158_s10 + $0x4] ss:$8 sps:$4 sm:$0xff]   ;;  %v2279_v55 = vld [vmem:[%s3158_s10 + $0x30] ss:$8 sps:$4 sm:$0xff]  }
  0x49   :  { %662 = vmatpush1.bf16.msra.mxu1 %v2220_v39  ;;  %v2284_v56 = vld [vmem:[%s3158_s10 + $0x44] ss:$8 sps:$4 sm:$0xff]  }
  0x4a   :  { %663 = vmatprep.subr.bf16.mxu1 %v2221_v40 }
  0x4b   :  { %2046 = vmatpush3.bf16.msra.mxu0 %v2253_v16 }
  0x4c   :  { %2047 = vmatprep.subr.bf16.mxu0 %v2255_v18 }
  0x4d   :  { %664 = vmatpush1.bf16.msra.mxu1 %v2223_v41 }
  0x4e   :  { %665 = vmatprep.subr.bf16.mxu1 %v2224_v42 }
  0x4f   :  { %2048 = vmatpush3.bf16.msra.mxu0 %v2258_v22 }
  0x50   :  { %2049 = vmatprep.subr.bf16.mxu0 %v2260_v24 }
  0x51   :  { %666 = vmatpush1.bf16.msra.mxu1 %v2226_v43 }
  0x52   :  { %667 = vmatprep.subr.bf16.mxu1 %v2227_v44  ;;  %v2270_v44 = vld [vmem:[%s3158_s10] ss:$8 sps:$4 sm:$0xff]  }
  0x53   :  { %2050 = vmatpush3.bf16.msra.mxu0 %v2263_v26  ;;  %v2296_v26 = vld [vmem:[%s3156_s8] sm:$0xff]  }
  0x54   :  { %2051 = vmatprep.subr.bf16.mxu0 %v2265_v28  ;;  %v2298_v28 = vld [vmem:[%s3156_s8 + $0x8] sm:$0xff]  }
  0x55   :  { %668 = vmatpush1.bf16.msra.mxu1 %v2229_v45 }
  0x56   :  { %669 = vmatprep.subr.bf16.mxu1 %v2231_v46  ;;  %v2275_v46 = vld [vmem:[%s3158_s10 + $0x14] ss:$8 sps:$4 sm:$0xff]  }
  0x57   :  { %2052 = vmatpush3.bf16.msra.mxu0 %v2268_v30  ;;  %v2300_v30 = vld [vmem:[%s3156_s8 + $0x10] sm:$0xff]  }
  0x58   :  { %818 = vmatprep.subr.bf16.mxu0 %v2272_v32  ;;  %v2302_v32 = vld [vmem:[%s3156_s8 + $0x18] sm:$0xff]  }
  0x59   :  { %670 = vmatpush1.bf16.msra.mxu1 %v2234_v47 }
  0x5a   :  { %671 = vmatprep.subr.bf16.mxu1 %v2236_v48  ;;  %v2273_v48 = vld [vmem:[%s3158_s10 + $0x10] ss:$8 sps:$4 sm:$0xff]  }
  0x5d   :  { %672 = vmatpush1.bf16.msra.mxu1 %v2239_v49  ;;  %v2278_v49 = vld [vmem:[%s3158_s10 + $0x24] ss:$8 sps:$4 sm:$0xff]  }
  0x5e   :  { %673 = vmatprep.subr.bf16.mxu1 %v2241_v50  ;;  %v2276_v50 = vld [vmem:[%s3158_s10 + $0x20] ss:$8 sps:$4 sm:$0xff]  }
  0x61   :  { %674 = vmatpush1.bf16.msra.mxu1 %v2244_v51 }
  0x62   :  { %675 = vmatprep.subr.bf16.mxu1 %v2246_v11 }
  0x65   :  { %676 = vmatpush1.bf16.msra.mxu1 %v2249_v13 }
  0x66   :  { %677 = vmatprep.subr.bf16.mxu1 %v2251_v15 }
  0x69   :  { %678 = vmatpush1.bf16.msra.mxu1 %v2254_v17  ;;  %v2829_v17 = vld [vmem:[%s3188_s4] sm:$0xff]  }
  0x6a   :  { %679 = vmatprep.subr.bf16.mxu1 %v2256_v19 }
  0x6d   :  { %680 = vmatpush1.bf16.msra.mxu1 %v2259_v23  ;;  %v2295_v23 = vld [vmem:[%s3156_s8 + $0x40] sm:$0xff]  }
  0x6e   :  { %681 = vmatprep.subr.bf16.mxu1 %v2261_v25 }
  0x71   :  { %682 = vmatpush1.bf16.msra.mxu1 %v2264_v27  ;;  %v2297_v27 = vld [vmem:[%s3156_s8 + $0x48] sm:$0xff]  }
  0x72   :  { %683 = vmatprep.subr.bf16.mxu1 %v2266_v29  ;;  %v2299_v29 = vld [vmem:[%s3156_s8 + $0x50] sm:$0xff]  }
  0x75   :  { %684 = vmatpush1.bf16.msra.mxu1 %v2269_v31  ;;  %v2301_v31 = vld [vmem:[%s3156_s8 + $0x58] sm:$0xff]  }
  0xc6   :  { %v254_v47 = vpop.xlane.xlu1 %253 }
  0xc7   :  { %v257_v53 = vmax.f32 %v254_v47, 1e-24  ;;  %v2317_v47 = vld [vmem:[%s3160_s12 + $0x30] sm:$0xff]  }
  0xca   :  { %v256_v51 = vpop.xlane.xlu1 %255 }
  0xcb   :  { %v258_v54 = vmax.f32 %v256_v51, 1e-24 }
 0x102   :  { %v222_v59 = vpop.f32.mrb[0].mxu0 }
 0x103   :  { %v2692_v60 = vadd.f32 %v222_v59, %v101_v57  ;;  %v224_v61 = vpop.f32.mrb[1].mxu0  ;;  %v2285_v59 = vld [vmem:[%s3158_s10 + $0x50] ss:$8 sps:$4 sm:$0xff]  }
 0x104   :  { %v2694_v62 = vadd.f32 %v224_v61, %v105_v58  ;;  %v226_v63 = vpop.f32.mrb[2].mxu0  ;;  %v2288_v61 = vld [vmem:[%s3158_s10 + $0x60] ss:$8 sps:$4 sm:$0xff]  }
 0x105   :  { %v2696_v0 = vadd.f32 %v226_v63, %v101_v57  ;;  %v228_v1 = vpop.f32.mrb[3].mxu0  ;;  %v231_v3 = vmul.f32 %v2692_v60, %v2692_v60  ;;  %v2282_v57 = vld [vmem:[%s3158_s10 + $0x40] ss:$8 sps:$4 sm:$0xff]   ;;  %v2293_v63 = vld [vmem:[%s3158_s10 + $0x74] ss:$8 sps:$4 sm:$0xff]  }
 0x106   :  { %v229_v4 = vadd.f32 %v228_v1, %v105_v58  ;;  %v232_v5 = vmul.f32 %v2694_v62, %v2694_v62  ;;  %v2287_v58 = vld [vmem:[%s3158_s10 + $0x54] ss:$8 sps:$4 sm:$0xff]   ;;  %v2291_v1 = vld [vmem:[%s3158_s10 + $0x70] ss:$8 sps:$4 sm:$0xff]  }
 0x107   :  { %v233_v6 = vmul.f32 %v2696_v0, %v2696_v0 }
 0x108   :  { %v234_v7 = vmul.f32 %v229_v4, %v229_v4  ;;  %v235_v8 = vadd.f32 %v232_v5, %v231_v3 }
 0x10a   :  { %236 = vadd.xlane.f32.xlu0 %v235_v8  ;;  %v238_v9 = vadd.f32 %v234_v7, %v233_v6  ;;  %v2416_v6 = vmov 0.0  }
 0x10e   :  { %239 = vadd.xlane.f32.xlu0 %v238_v9 }
 0x197   :  { %v237_v33 = vpop.xlane.xlu0 %236 }
 0x198   :  { %v241_v34 = vmax.f32 %v237_v33, 1e-24  ;;  %v2303_v33 = vld [vmem:[%s3156_s8 + $0x60] sm:$0xff]  }
 0x19a   :  { %2383 = vrsqrt.f32 %v241_v34  ;;  %v2304_v34 = vld [vmem:[%s3156_s8 + $0x20] sm:$0xff]  }
 0x19b   :  { %v240_v35 = vpop.xlane.xlu0 %239 }
 0x19c   :  { %v242_v36 = vmax.f32 %v240_v35, 1e-24  ;;  %v2305_v35 = vld [vmem:[%s3156_s8 + $0x68] sm:$0xff]  }
 0x19e   :  { %2385 = vrsqrt.f32 %v242_v36  ;;  %v2306_v36 = vld [vmem:[%s3156_s8 + $0x28] sm:$0xff]  }
 0x19f   :  { %2387 = vrsqrt.f32 %v257_v53 }
 0x1a0   :  { %2389 = vrsqrt.f32 %v258_v54 }
 0x1a4   :  { %v2384_v37 = vpop.eup %2383 }
 0x1a5   :  { %v246_v39 = vmul.f32 %v2384_v37, %v2694_v62  ;;  %v245_v41 = vmul.f32 %v2384_v37, %v2692_v60  ;;  %v2290_v60 = vld [vmem:[%s3158_s10 + $0x64] ss:$8 sps:$4 sm:$0xff]   ;;  %v2307_v37 = vld [vmem:[%s3156_s8 + $0x70] sm:$0xff]  }
 0x1a8   :  { %v2386_v38 = vpop.eup %2385 }
 0x1a9   :  { %v248_v40 = vmul.f32 %v2386_v38, %v229_v4  ;;  %v247_v42 = vmul.f32 %v2386_v38, %v2696_v0  ;;  %v2388_v62 = vpop.eup %2387  ;;  %v2308_v38 = vld [vmem:[%s3156_s8 + $0x30] sm:$0xff]  }
 0x1aa   :  { %v2390_v0 = vpop.eup %2389  ;;  %v261_v3 = vmul.f32 %v2388_v62, %v2594_v20 }
 0x1ab   :  { %v396_v43 = vpack.c.bf16 %v248_v40, %v246_v39  ;;  %v395_v45 = vpack.c.bf16 %v247_v42, %v245_v41  ;;  %v262_v4 = vmul.f32 %v2390_v0, %v2599_v21  ;;  %v2309_v39 = vld [vmem:[%s3156_s8 + $0x78] sm:$0xff]   ;;  %v2310_v40 = vld [vmem:[%s3160_s12] sm:$0xff]   ;;  %v2312_v42 = vld [vmem:[%s3160_s12 + $0x8] sm:$0xff]  }
 0x1ac   :  { %v2311_v41 = vld [vmem:[%s3156_s8 + $0x38] sm:$0xff]   ;;  %v2319_v0 = vld [vmem:[%s3162_s14] ss:$8 sps:$4 sm:$0xff]  }
 0x1ad   :  { %685 = vmatprep.mubr.bf16.mxu1 %v396_v43  ;;  %728 = vmatprep.mubr.bf16.mxu0 %v396_v43  ;;  %v737_v5 = vpack.c.bf16 %v262_v4, %v261_v3  ;;  %v2313_v43 = vld [vmem:[%s3160_s12 + $0x10] sm:$0xff]   ;;  %v2327_v4 = vld [vmem:[%s3162_s14 + $0x24] ss:$8 sps:$4 sm:$0xff]  }
 0x1ae   :  { %686 = vmatmul.mubr.bf16.vlgmr.msra.gmra.mrb[0].mxu1 %v395_v45  ;;  %729 = vmatmul.mubr.bf16.vlgmr.msra.gmra.mrb[4].mxu0 %v395_v45  ;;  %v2315_v45 = vld [vmem:[%s3160_s12 + $0x20] sm:$0xff]   ;;  %v2322_v3 = vld [vmem:[%s3162_s14 + $0x10] ss:$8 sps:$4 sm:$0xff]  }
 0x1af   :  { %819 = vmatpush1.bf16.msra.mxu0 %v2270_v44  ;;  %850 = vmatprep.mubr.bf16.mxu0 %v2415_v2  ;;  %v2314_v44 = vld [vmem:[%s3160_s12 + $0x18] sm:$0xff]  }
 0x1b0   :  { %820 = vmatprep.subr.bf16.mxu0 %v2275_v46  ;;  %905 = vmatprep.mubr.bf16.mxu1 %v2415_v2  ;;  %v2316_v46 = vld [vmem:[%s3160_s12 + $0x28] sm:$0xff]  }
 0x1b3   :  { %821 = vmatpush1.bf16.msra.mxu0 %v2273_v48  ;;  %v2318_v48 = vld [vmem:[%s3160_s12 + $0x38] sm:$0xff]  }
 0x1b4   :  { %822 = vmatprep.subr.bf16.mxu0 %v2278_v49  ;;  %v2321_v49 = vld [vmem:[%s3162_s14 + $0x4] ss:$8 sps:$4 sm:$0xff]  }
 0x1b7   :  { %823 = vmatpush1.bf16.msra.mxu0 %v2276_v50 }
 0x1b8   :  { %824 = vmatprep.subr.bf16.mxu0 %v2281_v52 }
 0x1bb   :  { %825 = vmatpush1.bf16.msra.mxu0 %v2279_v55 }
 0x1bc   :  { %826 = vmatprep.subr.bf16.mxu0 %v2284_v56 }
 0x1bf   :  { %827 = vmatpush1.bf16.msra.mxu0 %v2282_v57 }
 0x1c0   :  { %828 = vmatprep.subr.bf16.mxu0 %v2287_v58 }
 0x1c3   :  { %829 = vmatpush1.bf16.msra.mxu0 %v2285_v59 }
 0x1c4   :  { %830 = vmatprep.subr.bf16.mxu0 %v2290_v60 }
 0x1c7   :  { %831 = vmatpush1.bf16.msra.mxu0 %v2288_v61 }
 0x1c8   :  { %832 = vmatprep.subr.bf16.mxu0 %v2293_v63 }
 0x1cb   :  { %833 = vmatpush1.bf16.msra.mxu0 %v2291_v1  ;;  %v2324_v1 = vld [vmem:[%s3162_s14 + $0x14] ss:$8 sps:$4 sm:$0xff]  }
 0x1cc   :  { %2116 = vmatprep.subr.bf16.mxu0 %v2416_v6 }
 0x1ce   :  { %851 = vmatmul.mubr.bf16.vlgmr.msra.gmra.mrb[8].mxu0 %v737_v5  ;;  %v2325_v5 = vld [vmem:[%s3162_s14 + $0x20] ss:$8 sps:$4 sm:$0xff]  }
 0x1cf   :  { %2132 = vmatprep.mubr.msk.bf16.mxu0 %vm2417_vm0, %v2416_v6  ;;  %2117 = vmatpush3.bf16.msra.mxu0 %v2310_v40  ;;  %v2355_v40 = vld [vmem:[%s3166_s18 + $0x40] ss:$8 sps:$4 sm:$0xff]  }
 0x1d0   :  { %2118 = vmatprep.subr.bf16.mxu0 %v2416_v6 }
 0x1d3   :  { %2119 = vmatpush3.bf16.msra.mxu0 %v2312_v42  ;;  %v2358_v42 = vld [vmem:[%s3166_s18 + $0x50] ss:$8 sps:$4 sm:$0xff]  }
 0x1d4   :  { %2120 = vmatprep.subr.bf16.mxu0 %v2416_v6 }
 0x1d7   :  { %2121 = vmatpush3.bf16.msra.mxu0 %v2313_v43  ;;  %v2363_v43 = vld [vmem:[%s3166_s18 + $0x64] ss:$8 sps:$4 sm:$0xff]  }
 0x1d8   :  { %2122 = vmatprep.subr.bf16.mxu0 %v2416_v6 }
 0x1db   :  { %2123 = vmatpush3.bf16.msra.mxu0 %v2314_v44  ;;  %v2361_v44 = vld [vmem:[%s3166_s18 + $0x60] ss:$8 sps:$4 sm:$0xff]  }
 0x1dc   :  { %2124 = vmatprep.subr.bf16.mxu0 %v2416_v6 }
 0x1df   :  { %2125 = vmatpush3.bf16.msra.mxu0 %v2315_v45  ;;  %v2366_v45 = vld [vmem:[%s3166_s18 + $0x74] ss:$8 sps:$4 sm:$0xff]  }
 0x1e0   :  { %2126 = vmatprep.subr.bf16.mxu0 %v2416_v6 }
 0x1e3   :  { %2127 = vmatpush3.bf16.msra.mxu0 %v2316_v46  ;;  %v2364_v46 = vld [vmem:[%s3166_s18 + $0x70] ss:$8 sps:$4 sm:$0xff]  }
 0x1e4   :  { %2128 = vmatprep.subr.bf16.mxu0 %v2416_v6 }
 0x1e7   :  { %2129 = vmatpush3.bf16.msra.mxu0 %v2317_v47  ;;  %v1956_v47 = vld [vmem:[%s3155_s7] ss:$0 sm:$0xff] }
 0x1e8   :  { %2130 = vmatprep.subr.bf16.mxu0 %v2416_v6 }
 0x1eb   :  { %2131 = vmatpush3.bf16.msra.mxu0 %v2318_v48 }
 0x281   :  { %v687_v7 = vpop.f32.mrb[0].mxu1  ;;  %v2053_v8 = vpop.f32.mrb[4].mxu0 }
 0x282   :  { %v689_v9 = vpop.f32.mrb[1].mxu1  ;;  %v2054_v10 = vpop.f32.mrb[5].mxu0 }
 0x283   :  { %v2822_v11 = vadd.f32 %v2054_v10, %v2053_v8  ;;  %v691_v12 = vpop.f32.mrb[2].mxu1  ;;  %v2056_v20 = vpop.f32.mrb[6].mxu0  ;;  %v2328_v8 = vld [vmem:[%s3162_s14 + $0x30] ss:$8 sps:$4 sm:$0xff]  }
 0x284   :  { %v861_v13 = vpack.c.bf16 %v691_v12, %v687_v7  ;;  %v693_v21 = vpop.f32.mrb[3].mxu1  ;;  %v2057_v14 = vpop.f32.mrb[7].mxu0  ;;  %v2330_v7 = vld [vmem:[%s3162_s14 + $0x34] ss:$8 sps:$4 sm:$0xff]  }
 0x285   :  { %v862_v15 = vpack.c.bf16 %v693_v21, %v689_v9  ;;  %v2824_v16 = vadd.f32 %v2057_v14, %v2056_v20  ;;  %v975_v48 = vadd.f32 %v2822_v11, %v1956_v47  ;;  %v3036_v11 = vld [vmem:[%s3189_s2 + $0x8] sm:$0xff] }
 0x287   :  { %873 = vmatprep.subr.bf16.mxu1 %v862_v15 }
 0x288   :  { %874 = vmatpush1.bf16.msra.mxu1 %v861_v13 }
 0x289   :  { %2110 = vmatprep.subr.bf16.mxu1 %v2416_v6 }
 0x28b   :  { %1954 = vmatmul.mubr.msk.bf16.vlgmr.msra.gmra.mrb[4].mxu1 %vm869_vm1, %v2829_v17 }
 0x28c   :  { %2112 = vmatprep.mubr.msk.bf16.mxu1 %vm2417_vm0, %v2416_v6 }
 0x2a1   :  { %v852_v18 = vpop.f32.mrb[8].mxu0 }
 0x2a2   :  { %v2836_v19 = vpop.f32.mrb[9].mxu0 }
 0x2a3   :  { %v856_v22 = vpop.f32.mrb[10].mxu0 }
 0x2a4   :  { %v863_v24 = vpack.c.bf16 %v856_v22, %v852_v18  ;;  %v2841_v25 = vpop.f32.mrb[11].mxu0  ;;  %v2333_v22 = vld [vmem:[%s3162_s14 + $0x44] ss:$8 sps:$4 sm:$0xff]  }
 0x2a6   :  { %2111 = vmatpush3.bf16.msra.mxu1 %v863_v24  ;;  %v2336_v24 = vld [vmem:[%s3162_s14 + $0x54] ss:$8 sps:$4 sm:$0xff]  }
 0x2a7   :  { %2061 = vmatprep.subr.bf16.mxu1 %v2295_v23  ;;  %v2331_v23 = vld [vmem:[%s3162_s14 + $0x40] ss:$8 sps:$4 sm:$0xff]  }
 0x2a9   :  { %2113 = vmatmul.mubr.msk.bf16.vlgmr.msra.gmra.mrb[8].mxu1 %vm869_vm1, %v2829_v17 }
 0x2aa   :  { %2062 = vmatpush3.bf16.msra.mxu1 %v2296_v26  ;;  %v2334_v26 = vld [vmem:[%s3162_s14 + $0x50] ss:$8 sps:$4 sm:$0xff]  }
 0x2ab   :  { %2063 = vmatprep.subr.bf16.mxu1 %v2297_v27  ;;  %v2339_v27 = vld [vmem:[%s3162_s14 + $0x64] ss:$8 sps:$4 sm:$0xff]  }
 0x2ae   :  { %2064 = vmatpush3.bf16.msra.mxu1 %v2298_v28  ;;  %v2342_v28 = vld [vmem:[%s3166_s18 + $0x4] ss:$8 sps:$4 sm:$0xff]  }
 0x2af   :  { %2065 = vmatprep.subr.bf16.mxu1 %v2299_v29  ;;  %v2337_v29 = vld [vmem:[%s3162_s14 + $0x60] ss:$8 sps:$4 sm:$0xff]   ;;  %1523 = vmatprep.subr.bf16.mxu0 %v2342_v28 }
 0x2b2   :  { %2066 = vmatpush3.bf16.msra.mxu1 %v2300_v30  ;;  %v2340_v30 = vld [vmem:[%s3166_s18] ss:$8 sps:$4 sm:$0xff]  }
 0x2b3   :  { %2067 = vmatprep.subr.bf16.mxu1 %v2301_v31  ;;  %v2345_v31 = vld [vmem:[%s3162_s14 + $0x74] ss:$8 sps:$4 sm:$0xff]  }
 0x2b6   :  { %2068 = vmatpush3.bf16.msra.mxu1 %v2302_v32  ;;  %v2348_v32 = vld [vmem:[%s3166_s18 + $0x14] ss:$8 sps:$4 sm:$0xff]  }
 0x2b7   :  { %2069 = vmatprep.subr.bf16.mxu1 %v2303_v33  ;;  %v2343_v33 = vld [vmem:[%s3162_s14 + $0x70] ss:$8 sps:$4 sm:$0xff]  }
 0x2ba   :  { %2070 = vmatpush3.bf16.msra.mxu1 %v2304_v34  ;;  %v2346_v34 = vld [vmem:[%s3166_s18 + $0x10] ss:$8 sps:$4 sm:$0xff]  }
 0x2bb   :  { %2071 = vmatprep.subr.bf16.mxu1 %v2305_v35  ;;  %v2351_v35 = vld [vmem:[%s3166_s18 + $0x24] ss:$8 sps:$4 sm:$0xff]  }
 0x2be   :  { %2072 = vmatpush3.bf16.msra.mxu1 %v2306_v36  ;;  %v2349_v36 = vld [vmem:[%s3166_s18 + $0x20] ss:$8 sps:$4 sm:$0xff]  }
 0x2bf   :  { %2073 = vmatprep.subr.bf16.mxu1 %v2307_v37  ;;  %v2354_v37 = vld [vmem:[%s3166_s18 + $0x34] ss:$8 sps:$4 sm:$0xff]  }
 0x2c2   :  { %2074 = vmatpush3.bf16.msra.mxu1 %v2308_v38  ;;  %v2352_v38 = vld [vmem:[%s3166_s18 + $0x30] ss:$8 sps:$4 sm:$0xff]  }
 0x2c3   :  { %2075 = vmatprep.subr.bf16.mxu1 %v2309_v39  ;;  %v2357_v39 = vld [vmem:[%s3166_s18 + $0x44] ss:$8 sps:$4 sm:$0xff]  }
 0x2c6   :  { %2076 = vmatpush3.bf16.msra.mxu1 %v2311_v41  ;;  %v2360_v41 = vld [vmem:[%s3166_s18 + $0x54] ss:$8 sps:$4 sm:$0xff]  }
 0x2c7   :  { %1399 = vmatprep.subr.bf16.mxu1 %v2321_v49  ;;  %v976_v49 = vadd.f32 %v2824_v16, %v1956_v47 }
 0x35e   :  { %v907_v50 = vpop.f32.mrb[4].mxu1 }
 0x35f   :  { %v957_v51 = vmul.f32 0.01, %v907_v50  ;;  %v909_v52 = vpop.f32.mrb[5].mxu1 }
 0x360   :  { %v958_v53 = vmul.f32 0.01, %v909_v52  ;;  %v911_v54 = vpop.f32.mrb[6].mxu1 }
 0x361   :  { %v961_v55 = vmax.f32 %v907_v50, %v957_v51  ;;  %v959_v56 = vmul.f32 0.01, %v911_v54  ;;  %v913_v57 = vpop.f32.mrb[7].mxu1  ;;  %v977_v50 = vmul.f32 0.01, %v975_v48 }
 0x362   :  { %v962_v58 = vmax.f32 %v909_v52, %v958_v53  ;;  %v960_v59 = vmul.f32 0.01, %v913_v57  ;;  %v978_v51 = vmul.f32 0.01, %v976_v49 }
 0x363   :  { %v963_v60 = vmax.f32 %v911_v54, %v959_v56  ;;  %v979_v52 = vmax.f32 %v975_v48, %v977_v50  ;;  %v3028_v54 = vld [vmem:[%s3189_s2] sm:$0xff] }
 0x364   :  { %v964_v61 = vmax.f32 %v913_v57, %v960_v59  ;;  %v980_v57 = vmax.f32 %v976_v49, %v978_v51  ;;  %v2367_v51 = vld [vmem:[%s3164_s16] sm:$0xff]  }
 0x365   :  { %v997_v62 = vpack.c.bf16 %v963_v60, %v961_v55  ;;  %v1958_v55 = vld [vmem:[%s3157_s9] ss:$0 sm:$0xff]  ;;  %v981_v60 = vadd.f32 %v979_v52, %v3028_v54  ;;  %v2369_v52 = vld [vmem:[%s3164_s16 + $0x8] sm:$0xff]  }
 0x366   :  { %v998_v63 = vpack.c.bf16 %v964_v61, %v962_v58 }
 0x368   :  { %1133 = vmatprep.mubr.bf16.mxu1 %v998_v63 }
 0x369   :  { %1134 = vmatmul.mubr.bf16.vlgmr.msra.gmra.mrb[12].mxu1 %v997_v62 }
 0x36a   :  { %1400 = vmatpush1.bf16.msra.mxu1 %v2319_v0  ;;  %1431 = vmatprep.mubr.bf16.mxu1 %v2415_v2  ;;  %v982_v0 = vadd.f32 %v980_v57, %v3036_v11  ;;  %v2379_v57 = vld [vmem:[%s3164_s16 + $0x30] sm:$0xff]  }
 0x36b   :  { %1401 = vmatprep.subr.bf16.mxu1 %v2324_v1 }
 0x36e   :  { %1402 = vmatpush1.bf16.msra.mxu1 %v2322_v3 }
 0x36f   :  { %1403 = vmatprep.subr.bf16.mxu1 %v2327_v4 }
 0x372   :  { %1404 = vmatpush1.bf16.msra.mxu1 %v2325_v5 }
 0x373   :  { %1405 = vmatprep.subr.bf16.mxu1 %v2330_v7 }
 0x376   :  { %1406 = vmatpush1.bf16.msra.mxu1 %v2328_v8 }
 0x377   :  { %1407 = vmatprep.subr.bf16.mxu1 %v2333_v22 }
 0x37a   :  { %1408 = vmatpush1.bf16.msra.mxu1 %v2331_v23 }
 0x37b   :  { %1409 = vmatprep.subr.bf16.mxu1 %v2336_v24 }
 0x37c   :  { %v950_v9 = vpop.f32.mrb[8].mxu1 }
 0x37d   :  { %v965_v10 = vmul.f32 0.01, %v950_v9  ;;  %v2114_v12 = vpop.f32.mrb[9].mxu1 }
 0x37e   :  { %v953_v20 = vpop.f32.mrb[10].mxu1  ;;  %1410 = vmatpush1.bf16.msra.mxu1 %v2334_v26 }
 0x37f   :  { %v966_v13 = vmul.f32 0.01, %v953_v20  ;;  %v2115_v21 = vpop.f32.mrb[11].mxu1  ;;  %v967_v14 = vmax.f32 %v950_v9, %v965_v10  ;;  %1411 = vmatprep.subr.bf16.mxu1 %v2339_v27  ;;  %v1957_v9 = vld [vmem:[%s3159_s11] ss:$0 sm:$0xff] }
 0x380   :  { %v989_v12 = vadd.f32 %v1957_v9, %v2836_v19 }
 0x381   :  { %v968_v15 = vmax.f32 %v953_v20, %v966_v13  ;;  %v990_v20 = vadd.f32 %v1957_v9, %v2841_v25 }
 0x382   :  { %1412 = vmatpush1.bf16.msra.mxu1 %v2337_v29  ;;  %v991_v13 = vmul.f32 0.01, %v989_v12 }
 0x383   :  { %v1148_v18 = vpack.c.bf16 %v968_v15, %v967_v14  ;;  %1413 = vmatprep.subr.bf16.mxu1 %v2345_v31  ;;  %v992_v21 = vmul.f32 0.01, %v990_v20  ;;  %v1975_v15 = vld [vmem:[%s3161_s13] ss:$0 sm:$0xff] }
 0x384   :  { %v993_v14 = vmax.f32 %v989_v12, %v991_v13  ;;  %v2017_v12 = vld [vmem:[%s3163_s15] ss:$0 sm:$0xff] }
 0x385   :  { %2133 = vmatmul.mubr.bf16.vlgmr.msra.gmra.mrb[12].mxu0 %v1148_v18  ;;  %v994_v18 = vmax.f32 %v990_v20, %v992_v21  ;;  %v2018_v20 = vld [vmem:[%s3167_s19] ss:$0 sm:$0xff] }
 0x386   :  { %1555 = vmatprep.mubr.bf16.mxu0 %v2415_v2  ;;  %1524 = vmatpush1.bf16.msra.mxu0 %v2340_v30  ;;  %v995_v23 = vadd.f32 %v993_v14, %v3028_v54 }
 0x387   :  { %1525 = vmatprep.subr.bf16.mxu0 %v2348_v32  ;;  %1414 = vmatpush1.bf16.msra.mxu1 %v2343_v33  ;;  %v996_v19 = vadd.f32 %v994_v18, %v3036_v11 }
 0x38a   :  { %1526 = vmatpush1.bf16.msra.mxu0 %v2346_v34 }
 0x38b   :  { %1527 = vmatprep.subr.bf16.mxu0 %v2351_v35  ;;  %v2368_v35 = vld [vmem:[%s3168_s20] sm:$0xff]  }
 0x38e   :  { %1528 = vmatpush1.bf16.msra.mxu0 %v2349_v36  ;;  %v2370_v36 = vld [vmem:[%s3168_s20 + $0x8] sm:$0xff]  }
 0x38f   :  { %1529 = vmatprep.subr.bf16.mxu0 %v2354_v37  ;;  %v2372_v37 = vld [vmem:[%s3168_s20 + $0x10] sm:$0xff]  }
 0x392   :  { %1530 = vmatpush1.bf16.msra.mxu0 %v2352_v38  ;;  %v2374_v38 = vld [vmem:[%s3168_s20 + $0x18] sm:$0xff]  }
 0x393   :  { %1531 = vmatprep.subr.bf16.mxu0 %v2357_v39  ;;  %v2376_v39 = vld [vmem:[%s3168_s20 + $0x20] sm:$0xff]  }
 0x396   :  { %1532 = vmatpush1.bf16.msra.mxu0 %v2355_v40  ;;  %v2378_v40 = vld [vmem:[%s3168_s20 + $0x28] sm:$0xff]  }
 0x397   :  { %1533 = vmatprep.subr.bf16.mxu0 %v2360_v41 }
 0x39a   :  { %1534 = vmatpush1.bf16.msra.mxu0 %v2358_v42 }
 0x39b   :  { %1535 = vmatprep.subr.bf16.mxu0 %v2363_v43 }
 0x39e   :  { %1536 = vmatpush1.bf16.msra.mxu0 %v2361_v44 }
 0x39f   :  { %1537 = vmatprep.subr.bf16.mxu0 %v2366_v45 }
 0x3a2   :  { %1538 = vmatpush1.bf16.msra.mxu0 %v2364_v46 }
 0x3a3   :  { %2156 = vmatprep.subr.bf16.mxu0 %v2416_v6 }
 0x43c   :  { %v2077_v53 = vpop.f32.mrb[12].mxu1 }
 0x43d   :  { %v2078_v56 = vpop.f32.mrb[13].mxu1 }
 0x43e   :  { %v2079_v58 = vadd.f32 %v2078_v56, %v2077_v53  ;;  %v2080_v59 = vpop.f32.mrb[14].mxu1  ;;  %v2371_v53 = vld [vmem:[%s3164_s16 + $0x10] sm:$0xff]   ;;  %v2377_v56 = vld [vmem:[%s3164_s16 + $0x28] sm:$0xff]  }
 0x43f   :  { %v2081_v16 = vpop.f32.mrb[15].mxu1 }
 0x440   :  { %v1136_v61 = vadd.f32 %v2079_v58, %v1958_v55  ;;  %v2082_v62 = vadd.f32 %v2081_v16, %v2080_v59  ;;  %v2380_v58 = vld [vmem:[%s3168_s20 + $0x30] sm:$0xff]   ;;  %v2381_v59 = vld [vmem:[%s3164_s16 + $0x38] sm:$0xff]  }
 0x441   :  { %v2382_v16 = vld [vmem:[%s3168_s20 + $0x38] sm:$0xff]  }
 0x442   :  { %v1142_v63 = vadd.f32 %v1136_v61, %v981_v60  ;;  %v1139_v1 = vadd.f32 %v2082_v62, %v1958_v55  ;;  %v2375_v55 = vld [vmem:[%s3164_s16 + $0x20] sm:$0xff]  }
 0x444   :  { %v1144_v3 = vmul.f32 0.01, %v1142_v63  ;;  %v1143_v4 = vadd.f32 %v1139_v1, %v982_v0 }
 0x446   :  { %v1145_v5 = vmul.f32 0.01, %v1143_v4  ;;  %v1146_v7 = vmax.f32 %v1142_v63, %v1144_v3 }
 0x448   :  { %v1147_v8 = vmax.f32 %v1143_v4, %v1145_v5 }
 0x44a   :  { %v1318_v10 = vpack.c.bf16 %v1147_v8, %v1146_v7 }
 0x44c   :  { %1432 = vmatmul.mubr.bf16.vlgmr.msra.gmra.mrb[16].mxu1 %v1318_v10 }
 0x44d   :  { %1600 = vmatprep.mubr.bf16.mxu1 %v2415_v2 }
 0x458   :  { %v1237_v22 = vpop.f32.mrb[12].mxu0 }
 0x459   :  { %v1238_v24 = vadd.f32 %v1975_v15, %v1237_v22  ;;  %v2134_v26 = vpop.f32.mrb[13].mxu0 }
 0x45a   :  { %v1240_v27 = vpop.f32.mrb[14].mxu0 }
 0x45b   :  { %v1244_v28 = vadd.f32 %v1238_v24, %v995_v23  ;;  %v1241_v2 = vadd.f32 %v1975_v15, %v1240_v27  ;;  %v2135_v29 = vpop.f32.mrb[15].mxu0 }
 0x45d   :  { %v1246_v25 = vmul.f32 0.01, %v1244_v28  ;;  %v1245_v30 = vadd.f32 %v1241_v2, %v996_v19  ;;  %v2028_v2 = vld [vmem:[%s3169_s21] ss:$0 sm:$0xff] }
 0x45f   :  { %v1247_v31 = vmul.f32 0.01, %v1245_v30  ;;  %v1248_v32 = vmax.f32 %v1244_v28, %v1246_v25  ;;  %v2019_v28 = vld [vmem:[%s3165_s17] ss:$0 sm:$0xff]  ;;  %s2418_s17 = smov [#allocation2]  }
 0x460   :  { %s1862_s19 = sshll.u32 %s2418_s17, 4  ;;  %s1863_s19 = int_to_ptr.vmem [resolvable:$true] %s1862_s19 }
 0x461   :  { %v1249_v33 = vmax.f32 %v1245_v30, %v1247_v31  ;;  %s2391_s21 = scalar_lea.vmem %s1863_s19, 256  ;;  %p2396_p1 = scmp.lt.s32.totalorder %s1863_s19, %s1863_s19 }
 0x462   :  { %p2392_p0 = scmp.ne.s32.totalorder %s1863_s19, %s2391_s21  ;;  %p2397_p2 = scmp.lt.s32.totalorder %s2391_s21, %s2391_s21 }
 0x463   :  { %v1442_v34 = vpack.c.bf16 %v1249_v33, %v1248_v32 }
 0x464   :  { %p2398_p3 = por %p2397_p2, %p2396_p1 }
 0x465   :  { %1556 = vmatmul.mubr.bf16.vlgmr.msra.gmra.mrb[16].mxu0 %v1442_v34 }
 0x466   :  { %2172 = vmatprep.mubr.msk.bf16.mxu0 %vm2417_vm0, %v2416_v6  ;;  %2157 = vmatpush3.bf16.msra.mxu0 %v2368_v35  ;;  %p2399_p4 = pnand %p2398_p3, %p2392_p0 }
 0x467   :  { %2158 = vmatprep.subr.bf16.mxu0 %v2416_v6 }
 0x46a   :  { %2159 = vmatpush3.bf16.msra.mxu0 %v2370_v36 }
 0x46b   :  { %2160 = vmatprep.subr.bf16.mxu0 %v2416_v6 }
 0x46e   :  { %2161 = vmatpush3.bf16.msra.mxu0 %v2372_v37 }
 0x46f   :  { %2162 = vmatprep.subr.bf16.mxu0 %v2416_v6 }
 0x472   :  { %2163 = vmatpush3.bf16.msra.mxu0 %v2374_v38 }
 0x473   :  { %2164 = vmatprep.subr.bf16.mxu0 %v2416_v6 }
 0x476   :  { %2165 = vmatpush3.bf16.msra.mxu0 %v2376_v39 }
 0x477   :  { %2166 = vmatprep.subr.bf16.mxu0 %v2416_v6 }
 0x47a   :  { %2167 = vmatpush3.bf16.msra.mxu0 %v2378_v40 }
 0x47b   :  { %2168 = vmatprep.subr.bf16.mxu0 %v2416_v6 }
 0x47e   :  { %2169 = vmatpush3.bf16.msra.mxu0 %v2380_v58 }
 0x47f   :  { %2170 = vmatprep.subr.bf16.mxu0 %v2416_v6 }
 0x482   :  { %2171 = vmatpush3.bf16.msra.mxu0 %v2382_v16 }
 0x51f   :  { %v1433_v41 = vpop.f32.mrb[16].mxu1 }
 0x520   :  { %v1435_v42 = vpop.f32.mrb[17].mxu1 }
 0x521   :  { %v1437_v43 = vpop.f32.mrb[18].mxu1  ;;  %v1625_v13 = vadd.f32 %v2017_v12, %v1435_v42 }
 0x522   :  { %v1566_v44 = vpack.c.bf16 %v1437_v43, %v1433_v41  ;;  %v1439_v45 = vpop.f32.mrb[19].mxu1 }
 0x523   :  { %v1626_v14 = vadd.f32 %v2017_v12, %v1439_v45  ;;  %v1627_v18 = vmul.f32 0.01, %v1625_v13 }
 0x525   :  { %v1628_v23 = vmul.f32 0.01, %v1626_v14  ;;  %v1629_v26 = vmax.f32 %v1625_v13, %v1627_v18 }
 0x527   :  { %v1630_v19 = vmax.f32 %v1626_v14, %v1628_v23  ;;  %v1631_v30 = vadd.f32 %v1629_v26, %v3028_v54 }
 0x529   :  { %v1632_v39 = vadd.f32 %v1630_v19, %v3036_v11 }
 0x538   :  { %v1557_v46 = vpop.f32.mrb[16].mxu0 }
 0x539   :  { %v1559_v47 = vpop.f32.mrb[17].mxu0 }
 0x53a   :  { %v1561_v48 = vpop.f32.mrb[18].mxu0  ;;  %v1639_v21 = vadd.f32 %v2018_v20, %v1559_v47 }
 0x53b   :  { %v1567_v49 = vpack.c.bf16 %v1561_v48, %v1557_v46  ;;  %v1563_v50 = vpop.f32.mrb[19].mxu0 }
 0x53c   :  { %v1640_v15 = vadd.f32 %v2018_v20, %v1563_v50  ;;  %v1641_v22 = vmul.f32 0.01, %v1639_v21 }
 0x53d   :  { %1568 = vmatprep.subr.bf16.mxu1 %v1567_v49 }
 0x53e   :  { %1569 = vmatpush1.bf16.msra.mxu1 %v1566_v44  ;;  %v1642_v24 = vmul.f32 0.01, %v1640_v15  ;;  %v1643_v27 = vmax.f32 %v1639_v21, %v1641_v22 }
 0x53f   :  { %2136 = vmatprep.subr.bf16.mxu1 %v2416_v6 }
 0x540   :  { %v1644_v29 = vmax.f32 %v1640_v15, %v1642_v24  ;;  %v1645_v34 = vadd.f32 %v1643_v27, %v3028_v54 }
 0x541   :  { %2016 = vmatmul.mubr.msk.bf16.vlgmr.msra.gmra.mrb[20].mxu1 %vm869_vm1, %v2829_v17  ;;  %v2373_v17 = vld [vmem:[%s3164_s16 + $0x18] sm:$0xff]  }
 0x542   :  { %2137 = vmatpush3.bf16.msra.mxu1 %v2367_v51  ;;  %2152 = vmatprep.mubr.msk.bf16.mxu1 %vm2417_vm0, %v2416_v6  ;;  %v1646_v44 = vadd.f32 %v1644_v29, %v3036_v11 }
 0x543   :  { %2138 = vmatprep.subr.bf16.mxu1 %v2416_v6 }
 0x546   :  { %2139 = vmatpush3.bf16.msra.mxu1 %v2369_v52 }
 0x547   :  { %2140 = vmatprep.subr.bf16.mxu1 %v2416_v6 }
 0x54a   :  { %2141 = vmatpush3.bf16.msra.mxu1 %v2371_v53 }
 0x54b   :  { %2142 = vmatprep.subr.bf16.mxu1 %v2416_v6 }
 0x54e   :  { %2143 = vmatpush3.bf16.msra.mxu1 %v2373_v17 }
 0x54f   :  { %2144 = vmatprep.subr.bf16.mxu1 %v2416_v6 }
 0x552   :  { %2145 = vmatpush3.bf16.msra.mxu1 %v2375_v55 }
 0x553   :  { %2146 = vmatprep.subr.bf16.mxu1 %v2416_v6 }
 0x556   :  { %2147 = vmatpush3.bf16.msra.mxu1 %v2377_v56 }
 0x557   :  { %2148 = vmatprep.subr.bf16.mxu1 %v2416_v6 }
 0x55a   :  { %2149 = vmatpush3.bf16.msra.mxu1 %v2379_v57 }
 0x55b   :  { %2150 = vmatprep.subr.bf16.mxu1 %v2416_v6 }
 0x55e   :  { %2151 = vmatpush3.bf16.msra.mxu1 %v2381_v59 }
 0x614   :  { %v1602_v60 = vpop.f32.mrb[20].mxu1 }
 0x615   :  { %v1611_v61 = vmul.f32 0.01, %v1602_v60  ;;  %v1604_v62 = vpop.f32.mrb[21].mxu1 }
 0x616   :  { %v1615_v63 = vmul.f32 0.01, %v1604_v62  ;;  %v1606_v0 = vpop.f32.mrb[22].mxu1 }
 0x617   :  { %v1612_v1 = vmul.f32 0.01, %v1606_v0  ;;  %v1608_v3 = vpop.f32.mrb[23].mxu1  ;;  %v1613_v5 = vmax.f32 %v1602_v60, %v1611_v61 }
 0x618   :  { %v1616_v4 = vmul.f32 0.01, %v1608_v3  ;;  %v1617_v8 = vmax.f32 %v1604_v62, %v1615_v63 }
 0x619   :  { %v1614_v7 = vmax.f32 %v1606_v0, %v1612_v1 }
 0x61a   :  { %v1618_v9 = vmax.f32 %v1608_v3, %v1616_v4 }
 0x61b   :  { %v1647_v10 = vpack.c.bf16 %v1614_v7, %v1613_v5 }
 0x61c   :  { %v1749_v6 = vpack.c.bf16 %v1618_v9, %v1617_v8 }
 0x61d   :  { %2153 = vmatmul.mubr.bf16.vlgmr.msra.gmra.mrb[24].mxu1 %v1647_v10 }
 0x61e   :  { %2173 = vmatmul.mubr.bf16.vlgmr.msra.gmra.mrb[20].mxu0 %v1749_v6 }
 0x6f0   :  { %v1736_v25 = vpop.f32.mrb[24].mxu1 }
 0x6f1   :  { %v1737_v31 = vadd.f32 %v2019_v28, %v1736_v25  ;;  %v2154_v32 = vpop.f32.mrb[25].mxu1  ;;  %v1838_v33 = vpop.f32.mrb[20].mxu0 }
 0x6f2   :  { %v1839_v35 = vadd.f32 %v2028_v2, %v1838_v33  ;;  %v1739_v36 = vpop.f32.mrb[26].mxu1  ;;  %v2174_v37 = vpop.f32.mrb[21].mxu0 }
 0x6f3   :  { %v1743_v38 = vadd.f32 %v1737_v31, %v1631_v30  ;;  %v1740_v40 = vadd.f32 %v2019_v28, %v1739_v36  ;;  %v2155_v41 = vpop.f32.mrb[27].mxu1  ;;  %v1841_v42 = vpop.f32.mrb[22].mxu0 }
 0x6f4   :  { %v1845_v43 = vadd.f32 %v1839_v35, %v1645_v34  ;;  %v1842_v45 = vadd.f32 %v2028_v2, %v1841_v42  ;;  %v2175_v46 = vpop.f32.mrb[23].mxu0 }
 0x6f5   :  { %v1745_v47 = vmul.f32 0.01, %v1743_v38  ;;  %v1744_v48 = vadd.f32 %v1740_v40, %v1632_v39 }
 0x6f6   :  { %v1847_v49 = vmul.f32 0.01, %v1845_v43  ;;  %v1846_v50 = vadd.f32 %v1842_v45, %v1646_v44 }
 0x6f7   :  { %v1747_v51 = vmax.f32 %v1743_v38, %v1745_v47  ;;  %v1746_v54 = vmul.f32 0.01, %v1744_v48 }
 0x6f8   :  { %v1849_v52 = vmax.f32 %v1845_v43, %v1847_v49  ;;  %v1848_v53 = vmul.f32 0.01, %v1846_v50 }
 0x6f9   :  { %v1748_v17 = vmax.f32 %v1744_v48, %v1746_v54 }
 0x6fa   :  { %v1851_v55 = vadd.f32 %v1849_v52, %v1747_v51  ;;  %v1850_v56 = vmax.f32 %v1846_v50, %v1848_v53 }
 0x6fc   :  { %v1853_v57 = vmul.f32 0.5, %v1851_v55  ;;  %v1852_v58 = vadd.f32 %v1850_v56, %v1748_v17 }
 0x6fe   :  { %1855 = vst [vmem:[#allocation2] sm:$0xff] %v1853_v57  ;;  %v1854_v11 = vmul.f32 0.5, %v1852_v58 }
 0x700   :  { %1856 = vst [vmem:[#allocation2 + $0x8] sm:$0xff] %v1854_v11 }
 0x701   :  { %2402 = shalt.err (!%p2399_p4)
}
 0x702   :  { %s2403_s2 = scalar_lea.hbm %s3170_s22, 256 }
 0x703   :  { %p2404_p5 = scmp.ne.s32.totalorder %s3170_s22, %s2403_s2  ;;  %p2407_p6 = scmp.lt.u32.totalorder %s2403_s2, %s3170_s22 }
 0x705   :  { %p2409_p7 = pnand %p2407_p6, %p2404_p5 }
 0x707   :  { %2412 = shalt.err (!%p2409_p7)
}
 0x708   :  { %s2419_s9 = smov 128   ;;  %s2420_s30 = smov 8  }
 0x709   :  { %1868 = dma.vmem_to_hbm [thread:$0]  %s1863_s19, 256, %s3170_s22, [#allocation3], %s2419_s9, %s2419_s9, %s2420_s30  }
 0x70a   :  { %2413 = dma.done.wait [#allocation3], 256  }
 0x70b   :  { %2414 = vsyncadd [#allocation3], 4294967040 }
 0x70c   :  { %1872 = vsyncpa [#allocation3], 1 }

</bundles_post_ra>
